<compile_context>
chip_gen: v7x
topology: tpu7x:2x2x1
jax: 0.10.0
libtpu: 0.0.40
codegen_flags: <defaults>
</compile_context>

<pallas_src>
import functools

import jax
import jax.numpy as jnp
from jax.experimental import pallas as pl
from jax.experimental.pallas import tpu as pltpu


def _context_gating_kernel(x_ref, w1_ref, b1_ref, w2_ref, b2_ref, o_ref):
    # x_ref: (TM, Cp) row tile (native dtype); w1/b1/w2/b2 are whole-array
    # VMEM residents (loaded once, not double-buffered per grid step).
    x = x_ref[...]

    # hidden = relu(x @ W1 + b1)            (TM, Hp); MXU with f32 accumulate.
    h = jnp.dot(x, w1_ref[...], preferred_element_type=jnp.float32)
    h = jnp.maximum(h + b1_ref[...], 0.0)   # (1, Hp) broadcasts over rows

    # wx = h @ W2 + b2                      (TM, Cp)
    wx = jnp.dot(h, w2_ref[...], preferred_element_type=jnp.float32)
    wx = wx + b2_ref[...]                   # (1, Cp) broadcasts over rows

    gates = jax.nn.sigmoid(wx)
    o_ref[...] = (gates * x).astype(o_ref.dtype)


def _round_up(x, m):
    return (x + m - 1) // m * m


def _cdiv(a, b):
    return (a + b - 1) // b


def _pack_factor(c):
    """Pack p consecutive rows per 128-lane block when C divides 128."""
    if c < 128 and 128 % c == 0:
        return 128 // c
    return 1


def _block_diag(w, p):
    """blkdiag(w, ..., w) with p copies; keeps packed rows independent."""
    if p == 1:
        return w
    r, c = w.shape
    out = jnp.zeros((p * r, p * c), w.dtype)
    for j in range(p):
        out = out.at[j * r:(j + 1) * r, j * c:(j + 1) * c].set(w)
    return out


@functools.lru_cache(maxsize=1)
def _vmem_limit_bytes():
    """~75% of physical VMEM, capped at 96 MiB.

    v5e/v6e (128 MiB physical) -> 96 MiB; v7x (64 MiB per TensorCore) -> 48 MiB,
    which also leaves room for each core's own resident weight copy + buffers.
    """
    try:
        cap = int(pltpu.get_tpu_info().vmem_capacity_bytes)
    except Exception:  # fall back to the most conservative (v7x per-core) size
        cap = 64 * 1024 * 1024
    return int(min((cap * 3) // 4, 96 * 1024 * 1024))


def _pick_row_tile(rows_packed, cp, hp, requested, vmem_limit):
    """Pick a row tile so the double-buffered in/out tiles PLUS the in-kernel
    f32 intermediates (h, wx, gates) and the resident weights fit under the
    scoped VMEM limit, while keeping >= 2 grid steps (v7x megacore) and a
    multiple-of-8 sublane count."""
    # per-row f32 bytes: 2x in-bufs + 2x out-bufs + ~3 Cp-wide intermediates
    # + ~2 Hp-wide intermediates.
    bytes_per_row = (4 * cp + 3 * cp + 2 * hp) * 4
    weight_bytes = (2 * cp * hp + cp + hp) * 4
    budget = max(vmem_limit - weight_bytes - 4 * 1024 * 1024, 1 * 1024 * 1024)
    max_rows = max(8, budget // bytes_per_row)

    if requested is None:
        # Target >= ~2 MiB per streamed input buffer to amortize the fixed
        # ~0.35 us per-grid-step cost (HBM-bound kernel).
        requested = max(512, _round_up((2 * 1024 * 1024) // (4 * cp), 8))

    tile = min(int(requested), int(max_rows), _round_up(rows_packed, 8))
    if rows_packed > 8:
        # Keep at least 2 grid steps so both v7x TensorCores get work.
        tile = min(tile, max(8, _round_up(_cdiv(rows_packed, 2), 8)))
    return max(8, (tile // 8) * 8)


def context_gating(x, w1, b1, w2, b2, *, row_tile=None):
    """x: (..., C) float32; w1: (C, H); b1: (H,); w2: (H, C); b2: (C,)."""
    return _context_gating_impl(x, w1, b1, w2, b2, row_tile, _vmem_limit_bytes())


@functools.partial(jax.jit, static_argnums=(5, 6))
def _context_gating_impl(x, w1, b1, w2, b2, row_tile, vmem_limit):
    orig_shape = x.shape
    C = orig_shape[-1]
    H = w1.shape[1]
    x2d = x.reshape(-1, C)
    n_rows = x2d.shape[0]

    # Lane-dense packing: fold p consecutive rows into one (p*C)-lane row with
    # block-diagonal weights; math is unchanged because the blocks never mix.
    p = _pack_factor(C)
    pad = (-n_rows) % p
    if pad:
        x2d = jnp.concatenate([x2d, jnp.zeros((pad, C), x2d.dtype)], axis=0)
    rows_packed = (n_rows + pad) // p
    cp, hp = p * C, p * H
    xp = x2d.reshape(rows_packed, cp)

    w1p = _block_diag(w1, p)                 # (Cp, Hp)
    w2p = _block_diag(w2, p)                 # (Hp, Cp)
    b1p = jnp.tile(b1, p).reshape(1, hp)
    b2p = jnp.tile(b2, p).reshape(1, cp)

    tile = _pick_row_tile(rows_packed, cp, hp, row_tile, vmem_limit)
    grid = (_cdiv(rows_packed, tile),)

    # Weights/biases: single resident VMEM copy, no per-step pipelining.
    const_spec = pl.BlockSpec(memory_space=pltpu.MemorySpace.VMEM)

    itemsize = jnp.dtype(x.dtype).itemsize
    weight_bytes = (2 * cp * hp + cp + hp) * 4
    cost = pl.CostEstimate(
        flops=4 * n_rows * C * H + 4 * n_rows * C,
        transcendentals=n_rows * C,
        bytes_accessed=2 * rows_packed * cp * itemsize + weight_bytes,
    )

    out = pl.pallas_call(
        _context_gating_kernel,
        out_shape=jax.ShapeDtypeStruct((rows_packed, cp), x.dtype),
        grid_spec=pltpu.PrefetchScalarGridSpec(
            num_scalar_prefetch=0,
            grid=grid,
            in_specs=[
                pl.BlockSpec((tile, cp), lambda i: (i, 0)),  # packed x row tile
                const_spec,                                  # W1p (Cp, Hp)
                const_spec,                                  # b1p (1, Hp)
                const_spec,                                  # W2p (Hp, Cp)
                const_spec,                                  # b2p (1, Cp)
            ],
            out_specs=pl.BlockSpec((tile, cp), lambda i: (i, 0)),
        ),
        compiler_params=pltpu.CompilerParams(
            dimension_semantics=("parallel",),
            vmem_limit_bytes=vmem_limit,
        ),
        cost_estimate=cost,
    )(xp, w1p, b1p, w2p, b2p)

    out2d = out.reshape(rows_packed * p, C)[:n_rows]
    return out2d.reshape(orig_shape)


def init_params(key, input_size):
    """Deterministic Kaiming-style init matching nn.Linear shapes.

    PyTorch: linear1 = Linear(C, C//16), linear2 = Linear(C//16, C).
    Weights stored as (in, out) so the kernel does x @ W directly.
    """
    C = input_size
    Hd = input_size // 16
    k1, k2 = jax.random.split(key)
    w1 = jax.random.normal(k1, (C, Hd), dtype=jnp.float32) * jnp.sqrt(2.0 / Hd)
    b1 = jnp.zeros((Hd,), dtype=jnp.float32)
    w2 = jax.random.normal(k2, (Hd, C), dtype=jnp.float32) * jnp.sqrt(2.0 / C)
    b2 = jnp.zeros((C,), dtype=jnp.float32)
    return w1, b1, w2, b2


def _reference(x, w1, b1, w2, b2):
    s = x.shape
    x2 = x.reshape(-1, s[-1])
    h = jnp.maximum(x2 @ w1 + b1, 0.0)
    wx = h @ w2 + b2
    return (jax.nn.sigmoid(wx) * x2).reshape(s)


if __name__ == "__main__":
    key = jax.random.PRNGKey(0)
    kx, kx2, kp = jax.random.split(key, 3)

    input_size = 64          # must be divisible by 16 (hidden = 4)
    batch, seq = 2, 8        # leading dims, flattened inside the wrapper
    x = jax.random.normal(kx, (batch, seq, input_size), dtype=jnp.float32)

    w1, b1, w2, b2 = init_params(kp, input_size)

    out = jax.block_until_ready(context_gating(x, w1, b1, w2, b2))
    ref = _reference(x, w1, b1, w2, b2)
    assert out.shape == x.shape
    assert jnp.allclose(out, ref, atol=1e-5, rtol=1e-5)

    # Second check: multiple grid steps + ragged last block (120 rows -> 60
    # packed rows, tile 32), exercising the packing + ragged-grid path.
    x2 = jax.random.normal(kx2, (3, 40, input_size), dtype=jnp.float32)
    out2 = jax.block_until_ready(context_gating(x2, w1, b1, w2, b2, row_tile=32))
    ref2 = _reference(x2, w1, b1, w2, b2)
    assert out2.shape == x2.shape
    assert jnp.allclose(out2, ref2, atol=1e-5, rtol=1e-5)

    print("KERNEL_OK")
</pallas_src>

<mosaic_0001>
module attributes {stable_mosaic.version = 11 : i64} {
  func.func @_context_gating_kernel(%arg0: i32, %arg1: memref<8x128xf32, #tpu.memory_space<vmem>>, %arg2: memref<128x8xf32, #tpu.memory_space<vmem>>, %arg3: memref<1x8xf32, #tpu.memory_space<vmem>>, %arg4: memref<8x128xf32, #tpu.memory_space<vmem>>, %arg5: memref<1x128xf32, #tpu.memory_space<vmem>>, %arg6: memref<8x128xf32, #tpu.memory_space<vmem>>) attributes {dimension_semantics = [#tpu.dimension_semantics<parallel>], iteration_bounds = array<i64: 1>, scalar_prefetch = 0 : i64, scratch_operands = 0 : i64, tpu.core_type = #tpu.core_type<tc>, window_params = [{transform_indices = @transform_0, window_bounds = array<i64: 8, 128>}, {pipeline_mode = #tpu.pipeline_mode<synchronous>, transform_indices = @transform_1, window_bounds = array<i64: 128, 8>}, {pipeline_mode = #tpu.pipeline_mode<synchronous>, transform_indices = @transform_2, window_bounds = array<i64: 1, 8>}, {pipeline_mode = #tpu.pipeline_mode<synchronous>, transform_indices = @transform_3, window_bounds = array<i64: 8, 128>}, {pipeline_mode = #tpu.pipeline_mode<synchronous>, transform_indices = @transform_4, window_bounds = array<i64: 1, 128>}, {transform_indices = @transform_5, window_bounds = array<i64: 8, 128>}]} {
    %c0 = arith.constant 0 : index
    %c0_0 = arith.constant 0 : index
    %0 = vector.load %arg1[%c0, %c0_0] : memref<8x128xf32, #tpu.memory_space<vmem>>, vector<8x128xf32>
    %c0_1 = arith.constant 0 : index
    %c0_2 = arith.constant 0 : index
    %1 = vector.load %arg2[%c0_1, %c0_2] : memref<128x8xf32, #tpu.memory_space<vmem>>, vector<128x8xf32>
    %cst = arith.constant dense<0.000000e+00> : vector<8x8xf32>
    %2 = tpu.matmul %0, %1, %cst {dimension_numbers = #tpu.dot_dimension_numbers<[1], [0], [0], [1], [0, 0, 1, 1], [], []>} : vector<8x128xf32>, vector<128x8xf32>, vector<8x8xf32> -> vector<8x8xf32>
    %c0_3 = arith.constant 0 : index
    %c0_4 = arith.constant 0 : index
    %3 = vector.load %arg3[%c0_3, %c0_4] : memref<1x8xf32, #tpu.memory_space<vmem>>, vector<1x8xf32>
    %4 = vector.broadcast %3 : vector<1x8xf32> to vector<8x8xf32>
    %5 = arith.addf %2, %4 : vector<8x8xf32>
    %cst_5 = arith.constant 0.000000e+00 : f32
    %6 = vector.broadcast %cst_5 : f32 to vector<8x8xf32>
    %7 = arith.maximumf %5, %6 : vector<8x8xf32>
    %c0_6 = arith.constant 0 : index
    %c0_7 = arith.constant 0 : index
    %8 = vector.load %arg4[%c0_6, %c0_7] : memref<8x128xf32, #tpu.memory_space<vmem>>, vector<8x128xf32>
    %cst_8 = arith.constant dense<0.000000e+00> : vector<8x128xf32>
    %9 = tpu.matmul %7, %8, %cst_8 {dimension_numbers = #tpu.dot_dimension_numbers<[1], [0], [0], [1], [0, 0, 1, 1], [], []>} : vector<8x8xf32>, vector<8x128xf32>, vector<8x128xf32> -> vector<8x128xf32>
    %c0_9 = arith.constant 0 : index
    %c0_10 = arith.constant 0 : index
    %10 = vector.load %arg5[%c0_9, %c0_10] : memref<1x128xf32, #tpu.memory_space<vmem>>, vector<1x128xf32>
    %11 = vector.broadcast %10 : vector<1x128xf32> to vector<8x128xf32>
    %12 = arith.addf %9, %11 : vector<8x128xf32>
    %13 = arith.negf %12 : vector<8x128xf32>
    %14 = math.exp %13 : vector<8x128xf32>
    %cst_11 = arith.constant 1.000000e+00 : f32
    %15 = vector.broadcast %cst_11 : f32 to vector<8x128xf32>
    %16 = arith.addf %15, %14 : vector<8x128xf32>
    %17 = arith.divf %15, %16 : vector<8x128xf32>
    %18 = arith.mulf %17, %0 : vector<8x128xf32>
    %c0_12 = arith.constant 0 : index
    %c0_13 = arith.constant 0 : index
    %19 = vector.load %arg6[%c0_12, %c0_13] : memref<8x128xf32, #tpu.memory_space<vmem>>, vector<8x128xf32>
    tpu.vector_store %arg6[%c0_12, %c0_13], %18 {strides = array<i32>} : memref<8x128xf32, #tpu.memory_space<vmem>>, vector<8x128xf32>,
    return
  }
  func.func @transform_0(%arg0: i32) -> (i32, i32) {
    %c0_i32 = arith.constant 0 : i32
    %c0_i32_0 = arith.constant 0 : i32
    return %arg0, %c0_i32 : i32, i32
  }
  func.func @transform_1(%arg0: i32) -> (i32, i32) {
    %c0_i32 = arith.constant 0 : i32
    %c0_i32_0 = arith.constant 0 : i32
    %c0_i32_1 = arith.constant 0 : i32
    return %c0_i32, %c0_i32_0 : i32, i32
  }
  func.func @transform_2(%arg0: i32) -> (i32, i32) {
    %c0_i32 = arith.constant 0 : i32
    %c0_i32_0 = arith.constant 0 : i32
    %c0_i32_1 = arith.constant 0 : i32
    return %c0_i32, %c0_i32_0 : i32, i32
  }
  func.func @transform_3(%arg0: i32) -> (i32, i32) {
    %c0_i32 = arith.constant 0 : i32
    %c0_i32_0 = arith.constant 0 : i32
    %c0_i32_1 = arith.constant 0 : i32
    return %c0_i32, %c0_i32_0 : i32, i32
  }
  func.func @transform_4(%arg0: i32) -> (i32, i32) {
    %c0_i32 = arith.constant 0 : i32
    %c0_i32_0 = arith.constant 0 : i32
    %c0_i32_1 = arith.constant 0 : i32
    return %c0_i32, %c0_i32_0 : i32, i32
  }
  func.func @transform_5(%arg0: i32) -> (i32, i32) {
    %c0_i32 = arith.constant 0 : i32
    %c0_i32_0 = arith.constant 0 : i32
    return %arg0, %c0_i32 : i32, i32
  }
}

</mosaic_0001>

<bundles_post_ra>
// kernel: tile.13
= control target key start
LH: loop header
LB: loop body
LE: loop exit
PB: predicated region body
PF: predicated region fallthrough
CT: control target
= control target key end

     0   :  { %s22_s0 = inlined_call_operand.vmem [shape: f32[4], index: 0, kind: input, shape index: {}]   ;;  %s23_s1 = inlined_call_operand.vmem [shape: f32[2,4], index: 1, kind: output, shape index: {}]  }
   0x1   :  { %v4_v0 = vld [vmem:[%s22_s0] ss:$0 sm:$0xff] }
   0x2   :  { %5 = vst [vmem:[%s23_s1] sm:$0x3] %v4_v0 }

// kernel: tile.14
= control target key start
LH: loop header
LB: loop body
LE: loop exit
PB: predicated region body
PF: predicated region fallthrough
CT: control target
= control target key end

     0   :  { %vm7_vm0 = vcmask 31744   ;;  %vm13_vm1 = vcmask 64544   ;;  %s39_s0 = inlined_call_operand.vmem [shape: f32[2,4], index: 0, kind: input, shape index: {}]   ;;  %s40_s1 = inlined_call_operand.vmem [shape: f32[1,8], index: 1, kind: output, shape index: {}]  }
   0x1   :  { %v4_v0 = vld [vmem:[%s39_s0] sm:$0x3]  ;;  %s22_s0 = smov 4  }
   0x2   :  { %5 = vst [vmem:[#allocation1] sm:$0x3] %v4_v0 }
   0x9   :  { %v10_v1 = vld [vmem:[#allocation1 + $0x1] sm:$0x1]   ;;  %v6_v2 = vld [vmem:[#allocation1] sm:$0x1]  }
   0xa   :  { %11 = vrot.lane.b32.xlu0 %v10_v1, %s22_s0  ;;  %8 = vst.msk [vmem:[#allocation0] sm:$0x1] %vm7_vm0, %v6_v2  }
  0x7c   :  { %v12_v3 = vpop.permute.xlu0 %11  }
  0x7d   :  { %14 = vst.msk [vmem:[#allocation0] sm:$0x1] %vm13_vm1, %v12_v3  }
  0x84   :  { %v18_v4 = vld [vmem:[#allocation0] sm:$0x1] }
  0x85   :  { %20 = vst [vmem:[%s40_s1] sm:$0x1] %v18_v4 }

// kernel: tile.18
= control target key start
LH: loop header
LB: loop body
LE: loop exit
PB: predicated region body
PF: predicated region fallthrough
CT: control target
= control target key end

     0   :  { %s22_s0 = inlined_call_operand.vmem [shape: f32[64], index: 0, kind: input, shape index: {}]   ;;  %s23_s1 = inlined_call_operand.vmem [shape: f32[2,64], index: 1, kind: output, shape index: {}]  }
   0x1   :  { %v4_v0 = vld [vmem:[%s22_s0] ss:$0 sm:$0xff] }
   0x2   :  { %5 = vst [vmem:[%s23_s1] sm:$0x3] %v4_v0 }

// kernel: tile.19
= control target key start
LH: loop header
LB: loop body
LE: loop exit
PB: predicated region body
PF: predicated region fallthrough
CT: control target
= control target key end

     0   :  { %vm7_vm0 = vcmask 523264   ;;  %vm13_vm1 = vcmask 1048064   ;;  %s39_s0 = inlined_call_operand.vmem [shape: f32[2,64], index: 0, kind: input, shape index: {}]   ;;  %s40_s1 = inlined_call_operand.vmem [shape: f32[1,128], index: 1, kind: output, shape index: {}]  }
   0x1   :  { %v4_v0 = vld [vmem:[%s39_s0] sm:$0x3]  ;;  %s22_s0 = smov 64  }
   0x2   :  { %5 = vst [vmem:[#allocation1] sm:$0x3] %v4_v0 }
   0x9   :  { %v10_v1 = vld [vmem:[#allocation1 + $0x1] sm:$0x1]   ;;  %v6_v2 = vld [vmem:[#allocation1] sm:$0x1]  }
   0xa   :  { %11 = vrot.lane.b32.xlu0 %v10_v1, %s22_s0  ;;  %8 = vst.msk [vmem:[#allocation0] sm:$0x1] %vm7_vm0, %v6_v2  }
  0x7c   :  { %v12_v3 = vpop.permute.xlu0 %11  }
  0x7d   :  { %14 = vst.msk [vmem:[#allocation0] sm:$0x1] %vm13_vm1, %v12_v3  }
  0x84   :  { %v18_v4 = vld [vmem:[#allocation0] sm:$0x1] }
  0x85   :  { %20 = vst [vmem:[%s40_s1] sm:$0x1] %v18_v4 }

// kernel: _context_gating_impl.1
= control target key start
LH: loop header
LB: loop body
LE: loop exit
PB: predicated region body
PF: predicated region fallthrough
CT: control target
= control target key end

     0   :  { %v303_v0 = vmov 0.0|0.0   ;;  %vm304_vm0 = vmmov 0   ;;  %v305_v4 = vmov 0.0   ;;  %vm123_vm1 = vcmask 64512   ;;  %s399_s1 = inlined_call_operand.vmem [shape: f32[128,8], index: 1, kind: input, shape index: {}]   ;;  %s400_s0 = inlined_call_operand.vmem [shape: f32[8,128], index: 0, kind: input, shape index: {}]   ;;  %s401_s3 = inlined_call_operand.vmem [shape: f32[8,128], index: 3, kind: input, shape index: {}]   ;;  %s402_s2 = inlined_call_operand.vmem [shape: f32[1,8], index: 2, kind: input, shape index: {}]   ;;  %s403_s4 = inlined_call_operand.vmem [shape: f32[1,128], index: 4, kind: input, shape index: {}]   ;;  %s404_s5 = inlined_call_operand.vmem [shape: f32[8,128], index: 5, kind: output, shape index: {}]  }
   0x1   :  { %272 = vmatprep.subr.bf16.mxu0 %v303_v0  ;;  %v21_v1 = vld [vmem:[%s399_s1] sm:$0xff]  ;;  %v22_v2 = vld [vmem:[%s399_s1 + $0x8] sm:$0xff]  ;;  %v23_v3 = vld [vmem:[%s399_s1 + $0x10] sm:$0xff]  ;;  %264 = vmatprep.mubr.msk.f32.mxu0 %vm304_vm0, %v305_v4 }
   0x2   :  { %v273_v5 = vpack.c.bf16 %v22_v2, %v21_v1  ;;  %v24_v6 = vld [vmem:[%s399_s1 + $0x18] sm:$0xff]  ;;  %267 = vmatprep.subr.mxu1 %v305_v4  ;;  %269 = vmatprep.mubr.msk.f32.mxu1 %vm304_vm0, %v305_v4  ;;  %v25_v8 = vld [vmem:[%s399_s1 + $0x20] sm:$0xff]  ;;  %v26_v9 = vld [vmem:[%s399_s1 + $0x28] sm:$0xff] }
   0x3   :  { %v276_v7 = vpack.c.bf16 %v24_v6, %v23_v3  ;;  %v279_v10 = vpack.c.bf16 %v26_v9, %v25_v8  ;;  %v27_v11 = vld [vmem:[%s399_s1 + $0x30] sm:$0xff]  ;;  %v28_v12 = vld [vmem:[%s399_s1 + $0x38] sm:$0xff]  ;;  %v29_v14 = vld [vmem:[%s399_s1 + $0x40] sm:$0xff] }
   0x4   :  { %274 = vmatpush3.bf16.msra.mxu0 %v273_v5  ;;  %v282_v13 = vpack.c.bf16 %v28_v12, %v27_v11  ;;  %v30_v15 = vld [vmem:[%s399_s1 + $0x48] sm:$0xff]  ;;  %v31_v17 = vld [vmem:[%s399_s1 + $0x50] sm:$0xff]  ;;  %v32_v18 = vld [vmem:[%s399_s1 + $0x58] sm:$0xff] }
   0x5   :  { %275 = vmatprep.subr.bf16.mxu0 %v303_v0  ;;  %v285_v16 = vpack.c.bf16 %v30_v15, %v29_v14  ;;  %v288_v19 = vpack.c.bf16 %v32_v18, %v31_v17  ;;  %v33_v20 = vld [vmem:[%s399_s1 + $0x60] sm:$0xff]  ;;  %v34_v21 = vld [vmem:[%s399_s1 + $0x68] sm:$0xff]  ;;  %v35_v23 = vld [vmem:[%s399_s1 + $0x70] sm:$0xff] }
   0x6   :  { %v291_v22 = vpack.c.bf16 %v34_v21, %v33_v20  ;;  %v36_v24 = vld [vmem:[%s399_s1 + $0x78] sm:$0xff]  ;;  %v20_v26 = vld [vmem:[%s400_s0] sm:$0xff] }
   0x7   :  { %v294_v25 = vpack.c.bf16 %v36_v24, %v35_v23  ;;  %v115_v27 = vld [vmem:[%s401_s3] sm:$0xff] }
   0x8   :  { %277 = vmatpush3.bf16.msra.mxu0 %v276_v7  ;;  %268 = vmatpush3.msra.mxu1 %v115_v27  ;;  %v209_v28 = vld [vmem:[%s402_s2] ss:$0 sm:$0xff] }
   0x9   :  { %278 = vmatprep.subr.bf16.mxu0 %v303_v0  ;;  %v210_v33 = vld [vmem:[%s403_s4] ss:$0 sm:$0xff] }
   0xc   :  { %280 = vmatpush3.bf16.msra.mxu0 %v279_v10 }
   0xd   :  { %281 = vmatprep.subr.bf16.mxu0 %v303_v0 }
  0x10   :  { %283 = vmatpush3.bf16.msra.mxu0 %v282_v13 }
  0x11   :  { %284 = vmatprep.subr.bf16.mxu0 %v303_v0 }
  0x14   :  { %286 = vmatpush3.bf16.msra.mxu0 %v285_v16 }
  0x15   :  { %287 = vmatprep.subr.bf16.mxu0 %v303_v0 }
  0x18   :  { %289 = vmatpush3.bf16.msra.mxu0 %v288_v19 }
  0x19   :  { %290 = vmatprep.subr.bf16.mxu0 %v303_v0 }
  0x1c   :  { %292 = vmatpush3.bf16.msra.mxu0 %v291_v22 }
  0x1d   :  { %293 = vmatprep.subr.bf16.mxu0 %v303_v0 }
  0x20   :  { %295 = vmatpush3.bf16.msra.mxu0 %v294_v25 }
  0x23   :  { %265 = vmatmul.mubr.f32.vlgmr.msra.gmra.mrb[0].mxu0 %v20_v26 }
  0xf6   :  { %v110_v29 = vpop.f32.mrb[0].mxu0 }
  0xf7   :  { %v111_v30 = vadd.f32 %v209_v28, %v110_v29  ;;  %v266_v31 = vpop.f32.mrb[1].mxu0 }
  0xf9   :  { %v114_v32 = vmax.f32 %v111_v30, 0.0 }
  0xfb   :  { %270 = vmatmul.mubr.msk.f32.vlgmr.msra.gmra.mrb[0].mxu1 %vm123_vm1, %v114_v32 }
 0x1ce   :  { %v193_v34 = vpop.f32.mrb[0].mxu1 }
 0x1cf   :  { %v194_v35 = vadd.f32 %v210_v33, %v193_v34  ;;  %v271_v36 = vpop.f32.mrb[1].mxu1 }
 0x1d1   :  { %v212_v37 = vmul.f32 -1.442695, %v194_v35 }
 0x1d3   :  { %299 = vpow2.f32 %v212_v37 }
 0x1dd   :  { %v300_v38 = vpop.eup %299 }
 0x1de   :  { %v200_v39 = vadd.f32 1.0, %v300_v38 }
 0x1e0   :  { %301 = vrcp.f32 %v200_v39 }
 0x1ea   :  { %v302_v40 = vpop.eup %301 }
 0x1eb   :  { %v203_v41 = vmul.f32 %v302_v40, %v20_v26 }
 0x1ed   :  { %204 = vst [vmem:[%s404_s5] sm:$0xff] %v203_v41 }

</bundles_post_ra>
